<compile_context>
chip_gen: v5e
topology: v5e:2x2
jax: 0.10.0
libtpu: 0.0.40
codegen_flags: <defaults>
</compile_context>

<pallas_src>
import functools

import jax
import jax.numpy as jnp
from jax.experimental import pallas as pl
from jax.experimental.pallas import tpu as pltpu


def rnn_classifier_kernel(x2d_ref, w_ih_t_ref, w_hh_t_ref, b_ref,
                          w_fc_t_ref, b_fc_ref, out_ref, xw_ref):
    # x2d_ref:    (T*Bp, I)  bf16  time-major, batch-padded, flattened input
    # w_ih_t_ref: (I, H)     bf16  W_ih^T
    # w_hh_t_ref: (H, H)     bf16  W_hh^T
    # b_ref:      (1, H)     f32   b_ih + b_hh (combined)
    # w_fc_t_ref: (H, Lp)    bf16  classifier weight^T (lane-padded)
    # b_fc_ref:   (1, Lp)    f32   classifier bias (lane-padded)
    # out_ref:    (Bp, Lp)   f32   logits (padded; sliced back in the wrapper)
    # xw_ref:     (T*Bp, H)  f32   VMEM scratch for the hoisted input projection
    Bp = out_ref.shape[0]
    T = x2d_ref.shape[0] // Bp

    # Prologue: project ALL timesteps through W_ih in one bf16 MXU matmul, fold
    # in the bias, and park the result in VMEM scratch so the unrolled loop
    # only keeps one (Bp, H) tile live at a time.
    xw_ref[...] = (jnp.dot(x2d_ref[...], w_ih_t_ref[...],
                           preferred_element_type=jnp.float32)
                   + b_ref[...])                                  # (T*Bp, H) f32

    w_hh_t = w_hh_t_ref[...]                                      # (H, H) bf16

    # First step: h0 == 0, so the hidden matmul is dead -> h1 = tanh(xw[0]).
    h = jnp.tanh(xw_ref[0:Bp, :])                                 # (Bp, H) f32

    # Statically unrolled recurrence: one single-pass bf16 MXU matmul + add +
    # tanh (EUP) per step. Each xw slice is a static, sublane-aligned VMEM load
    # the scheduler can hoist ahead of use.
    for t in range(1, T):
        hv = jnp.dot(h.astype(jnp.bfloat16), w_hh_t,
                     preferred_element_type=jnp.float32)
        h = jnp.tanh(xw_ref[t * Bp:(t + 1) * Bp, :] + hv)

    # Classifier head (bf16 matmul, lane-dense padded output -> unmasked vst).
    logits = (jnp.dot(h.astype(jnp.bfloat16), w_fc_t_ref[...],
                      preferred_element_type=jnp.float32)
              + b_fc_ref[...])
    out_ref[...] = logits.astype(out_ref.dtype)


def prepare_mnist_classifier_params(w_ih, w_hh, b_ih, b_hh, w_fc, b_fc):
    """One-time parameter preprocessing (hoisted out of the forward path)."""
    H = w_hh.shape[0]
    L = w_fc.shape[0]
    Lp = ((L + 127) // 128) * 128                                 # lane-dense
    w_ih_t = w_ih.T.astype(jnp.bfloat16)                          # (I, H)
    w_hh_t = w_hh.T.astype(jnp.bfloat16)                          # (H, H)
    b = (b_ih + b_hh).reshape(1, H).astype(jnp.float32)           # (1, H)
    w_fc_t = jnp.pad(w_fc.T.astype(jnp.float32),
                     ((0, 0), (0, Lp - L))).astype(jnp.bfloat16)  # (H, Lp)
    b_fc2 = jnp.pad(b_fc.astype(jnp.float32),
                    (0, Lp - L)).reshape(1, Lp)                   # (1, Lp)
    return (w_ih_t, w_hh_t, b, w_fc_t, b_fc2)


@functools.partial(jax.jit, static_argnames=("num_labels",))
def mnist_classifier_forward(x, params, *, num_labels):
    """x: (B, T, I) batch-first, like PyTorch. Returns logits (B, num_labels)."""
    w_ih_t, w_hh_t, b, w_fc_t, b_fc2 = params
    B, T, I = x.shape
    H = w_hh_t.shape[0]
    Lp = w_fc_t.shape[1]
    Bp = ((B + 7) // 8) * 8                                       # sublane-aligned

    # Per-call input prep only: time-major, zero-pad batch rows, flatten, bf16.
    x_tm = jnp.transpose(x, (1, 0, 2))                            # (T, B, I)
    x_tm = jnp.pad(x_tm, ((0, 0), (0, Bp - B), (0, 0)))           # (T, Bp, I)
    x2d = x_tm.reshape(T * Bp, I).astype(jnp.bfloat16)            # (T*Bp, I)

    # Realistic (tiny) cost estimate so XLA doesn't serialize around the call.
    flops = (2 * T * Bp * I * H          # input projection
             + 2 * (T - 1) * Bp * H * H  # recurrence
             + 2 * Bp * H * Lp)          # classifier head
    transcendentals = T * Bp * H         # tanh
    bytes_accessed = (T * Bp * I * 2 + I * H * 2 + H * H * 2 + H * 4
                      + H * Lp * 2 + Lp * 4 + Bp * Lp * 4)

    # Whole problem is a few KiB: everything lives in VMEM, single grid step.
    full = lambda shape: pl.BlockSpec(shape, lambda: tuple(0 for _ in shape),
                                      memory_space=pltpu.VMEM)
    out_pad = pl.pallas_call(
        rnn_classifier_kernel,
        out_shape=jax.ShapeDtypeStruct((Bp, Lp), jnp.float32),
        in_specs=[full((T * Bp, I)), full((I, H)), full((H, H)),
                  full((1, H)), full((H, Lp)), full((1, Lp))],
        out_specs=full((Bp, Lp)),
        scratch_shapes=[pltpu.VMEM((T * Bp, H), jnp.float32)],
        cost_estimate=pl.CostEstimate(flops=flops,
                                      transcendentals=transcendentals,
                                      bytes_accessed=bytes_accessed),
    )(x2d, w_ih_t, w_hh_t, b, w_fc_t, b_fc2)
    return out_pad[:B, :num_labels]


def _reference_forward(x, w_ih, w_hh, b_ih, b_hh, w_fc, b_fc):
    """Pure-JAX f32 reference matching torch.nn.RNN(batch_first=True) + Linear."""
    B, T, I = x.shape
    H = w_hh.shape[0]
    h = jnp.zeros((B, H), jnp.float32)
    for t in range(T):
        h = jnp.tanh(x[:, t, :] @ w_ih.T + b_ih + h @ w_hh.T + b_hh)
    return h @ w_fc.T + b_fc


if __name__ == "__main__":
    # Small MNIST-like problem: rows of a 16x16 image fed as a length-16 sequence.
    B, T = 4, 16
    input_size, hidden_size, num_labels = 16, 32, 10

    key = jax.random.PRNGKey(0)
    kx, k1, k2, k3, k4, k5, k6 = jax.random.split(key, 7)

    # Deterministic parameter init (PyTorch-style uniform(-1/sqrt(H), 1/sqrt(H))).
    bound = 1.0 / (hidden_size ** 0.5)
    u = lambda k, shape: jax.random.uniform(k, shape, jnp.float32, -bound, bound)
    w_ih = u(k1, (hidden_size, input_size))
    w_hh = u(k2, (hidden_size, hidden_size))
    b_ih = u(k3, (hidden_size,))
    b_hh = u(k4, (hidden_size,))
    w_fc = u(k5, (num_labels, hidden_size))
    b_fc = u(k6, (num_labels,))

    x = jax.random.normal(kx, (B, T, input_size), jnp.float32)

    params = prepare_mnist_classifier_params(w_ih, w_hh, b_ih, b_hh, w_fc, b_fc)
    logits = mnist_classifier_forward(x, params, num_labels=num_labels)
    logits = jax.block_until_ready(logits)

    ref = _reference_forward(x, w_ih, w_hh, b_ih, b_hh, w_fc, b_fc)
    assert logits.shape == (B, num_labels)
    # bf16 MXU operands (f32 accumulation) => relaxed tolerance vs f32 reference.
    assert jnp.allclose(logits, ref, atol=3e-2, rtol=3e-2), \
        float(jnp.max(jnp.abs(logits - ref)))

    print("KERNEL_OK")
</pallas_src>

<mosaic_0001>
module attributes {stable_mosaic.version = 11 : i64} {
  func.func @rnn_classifier_kernel(%arg0: memref<128x16xbf16, #tpu.memory_space<vmem>>, %arg1: memref<16x32xbf16, #tpu.memory_space<vmem>>, %arg2: memref<32x32xbf16, #tpu.memory_space<vmem>>, %arg3: memref<1x32xf32, #tpu.memory_space<vmem>>, %arg4: memref<32x128xbf16, #tpu.memory_space<vmem>>, %arg5: memref<1x128xf32, #tpu.memory_space<vmem>>, %arg6: memref<8x128xf32, #tpu.memory_space<vmem>>, %arg7: memref<128x32xf32, #tpu.memory_space<vmem>>) attributes {dimension_semantics = [], scalar_prefetch = 0 : i64, scratch_operands = 1 : i64, tpu.core_type = #tpu.core_type<tc>} {
    %c0 = arith.constant 0 : index
    %c0_0 = arith.constant 0 : index
    %0 = vector.load %arg0[%c0, %c0_0] : memref<128x16xbf16, #tpu.memory_space<vmem>>, vector<128x16xbf16>
    %c0_1 = arith.constant 0 : index
    %c0_2 = arith.constant 0 : index
    %1 = vector.load %arg1[%c0_1, %c0_2] : memref<16x32xbf16, #tpu.memory_space<vmem>>, vector<16x32xbf16>
    %cst = arith.constant dense<0.000000e+00> : vector<128x32xf32>
    %2 = tpu.matmul %0, %1, %cst {dimension_numbers = #tpu.dot_dimension_numbers<[1], [0], [0], [1], [0, 0, 1, 1], [], []>} : vector<128x16xbf16>, vector<16x32xbf16>, vector<128x32xf32> -> vector<128x32xf32>
    %c0_3 = arith.constant 0 : index
    %c0_4 = arith.constant 0 : index
    %3 = vector.load %arg3[%c0_3, %c0_4] : memref<1x32xf32, #tpu.memory_space<vmem>>, vector<1x32xf32>
    %4 = vector.broadcast %3 : vector<1x32xf32> to vector<128x32xf32>
    %5 = arith.addf %2, %4 : vector<128x32xf32>
    %c0_5 = arith.constant 0 : index
    %c0_6 = arith.constant 0 : index
    %6 = vector.load %arg7[%c0_5, %c0_6] : memref<128x32xf32, #tpu.memory_space<vmem>>, vector<128x32xf32>
    tpu.vector_store %arg7[%c0_5, %c0_6], %5 {strides = array<i32>} : memref<128x32xf32, #tpu.memory_space<vmem>>, vector<128x32xf32>,
    %c0_7 = arith.constant 0 : index
    %c0_8 = arith.constant 0 : index
    %7 = vector.load %arg2[%c0_7, %c0_8] : memref<32x32xbf16, #tpu.memory_space<vmem>>, vector<32x32xbf16>
    %c0_9 = arith.constant 0 : index
    %c0_10 = arith.constant 0 : index
    %8 = vector.load %arg7[%c0_9, %c0_10] : memref<128x32xf32, #tpu.memory_space<vmem>>, vector<8x32xf32>
    %9 = math.tanh %8 : vector<8x32xf32>
    %10 = arith.truncf %9 : vector<8x32xf32> to vector<8x32xbf16>
    %cst_11 = arith.constant dense<0.000000e+00> : vector<8x32xf32>
    %11 = tpu.matmul %10, %7, %cst_11 {dimension_numbers = #tpu.dot_dimension_numbers<[1], [0], [0], [1], [0, 0, 1, 1], [], []>} : vector<8x32xbf16>, vector<32x32xbf16>, vector<8x32xf32> -> vector<8x32xf32>
    %c8 = arith.constant 8 : index
    %c0_12 = arith.constant 0 : index
    %12 = vector.load %arg7[%c8, %c0_12] : memref<128x32xf32, #tpu.memory_space<vmem>>, vector<8x32xf32>
    %13 = arith.addf %12, %11 : vector<8x32xf32>
    %14 = math.tanh %13 : vector<8x32xf32>
    %15 = arith.truncf %14 : vector<8x32xf32> to vector<8x32xbf16>
    %cst_13 = arith.constant dense<0.000000e+00> : vector<8x32xf32>
    %16 = tpu.matmul %15, %7, %cst_13 {dimension_numbers = #tpu.dot_dimension_numbers<[1], [0], [0], [1], [0, 0, 1, 1], [], []>} : vector<8x32xbf16>, vector<32x32xbf16>, vector<8x32xf32> -> vector<8x32xf32>
    %c16 = arith.constant 16 : index
    %c0_14 = arith.constant 0 : index
    %17 = vector.load %arg7[%c16, %c0_14] : memref<128x32xf32, #tpu.memory_space<vmem>>, vector<8x32xf32>
    %18 = arith.addf %17, %16 : vector<8x32xf32>
    %19 = math.tanh %18 : vector<8x32xf32>
    %20 = arith.truncf %19 : vector<8x32xf32> to vector<8x32xbf16>
    %cst_15 = arith.constant dense<0.000000e+00> : vector<8x32xf32>
    %21 = tpu.matmul %20, %7, %cst_15 {dimension_numbers = #tpu.dot_dimension_numbers<[1], [0], [0], [1], [0, 0, 1, 1], [], []>} : vector<8x32xbf16>, vector<32x32xbf16>, vector<8x32xf32> -> vector<8x32xf32>
    %c24 = arith.constant 24 : index
    %c0_16 = arith.constant 0 : index
    %22 = vector.load %arg7[%c24, %c0_16] : memref<128x32xf32, #tpu.memory_space<vmem>>, vector<8x32xf32>
    %23 = arith.addf %22, %21 : vector<8x32xf32>
    %24 = math.tanh %23 : vector<8x32xf32>
    %25 = arith.truncf %24 : vector<8x32xf32> to vector<8x32xbf16>
    %cst_17 = arith.constant dense<0.000000e+00> : vector<8x32xf32>
    %26 = tpu.matmul %25, %7, %cst_17 {dimension_numbers = #tpu.dot_dimension_numbers<[1], [0], [0], [1], [0, 0, 1, 1], [], []>} : vector<8x32xbf16>, vector<32x32xbf16>, vector<8x32xf32> -> vector<8x32xf32>
    %c32 = arith.constant 32 : index
    %c0_18 = arith.constant 0 : index
    %27 = vector.load %arg7[%c32, %c0_18] : memref<128x32xf32, #tpu.memory_space<vmem>>, vector<8x32xf32>
    %28 = arith.addf %27, %26 : vector<8x32xf32>
    %29 = math.tanh %28 : vector<8x32xf32>
    %30 = arith.truncf %29 : vector<8x32xf32> to vector<8x32xbf16>
    %cst_19 = arith.constant dense<0.000000e+00> : vector<8x32xf32>
    %31 = tpu.matmul %30, %7, %cst_19 {dimension_numbers = #tpu.dot_dimension_numbers<[1], [0], [0], [1], [0, 0, 1, 1], [], []>} : vector<8x32xbf16>, vector<32x32xbf16>, vector<8x32xf32> -> vector<8x32xf32>
    %c40 = arith.constant 40 : index
    %c0_20 = arith.constant 0 : index
    %32 = vector.load %arg7[%c40, %c0_20] : memref<128x32xf32, #tpu.memory_space<vmem>>, vector<8x32xf32>
    %33 = arith.addf %32, %31 : vector<8x32xf32>
    %34 = math.tanh %33 : vector<8x32xf32>
    %35 = arith.truncf %34 : vector<8x32xf32> to vector<8x32xbf16>
    %cst_21 = arith.constant dense<0.000000e+00> : vector<8x32xf32>
    %36 = tpu.matmul %35, %7, %cst_21 {dimension_numbers = #tpu.dot_dimension_numbers<[1], [0], [0], [1], [0, 0, 1, 1], [], []>} : vector<8x32xbf16>, vector<32x32xbf16>, vector<8x32xf32> -> vector<8x32xf32>
    %c48 = arith.constant 48 : index
    %c0_22 = arith.constant 0 : index
    %37 = vector.load %arg7[%c48, %c0_22] : memref<128x32xf32, #tpu.memory_space<vmem>>, vector<8x32xf32>
    %38 = arith.addf %37, %36 : vector<8x32xf32>
    %39 = math.tanh %38 : vector<8x32xf32>
    %40 = arith.truncf %39 : vector<8x32xf32> to vector<8x32xbf16>
    %cst_23 = arith.constant dense<0.000000e+00> : vector<8x32xf32>
    %41 = tpu.matmul %40, %7, %cst_23 {dimension_numbers = #tpu.dot_dimension_numbers<[1], [0], [0], [1], [0, 0, 1, 1], [], []>} : vector<8x32xbf16>, vector<32x32xbf16>, vector<8x32xf32> -> vector<8x32xf32>
    %c56 = arith.constant 56 : index
    %c0_24 = arith.constant 0 : index
    %42 = vector.load %arg7[%c56, %c0_24] : memref<128x32xf32, #tpu.memory_space<vmem>>, vector<8x32xf32>
    %43 = arith.addf %42, %41 : vector<8x32xf32>
    %44 = math.tanh %43 : vector<8x32xf32>
    %45 = arith.truncf %44 : vector<8x32xf32> to vector<8x32xbf16>
    %cst_25 = arith.constant dense<0.000000e+00> : vector<8x32xf32>
    %46 = tpu.matmul %45, %7, %cst_25 {dimension_numbers = #tpu.dot_dimension_numbers<[1], [0], [0], [1], [0, 0, 1, 1], [], []>} : vector<8x32xbf16>, vector<32x32xbf16>, vector<8x32xf32> -> vector<8x32xf32>
    %c64 = arith.constant 64 : index
    %c0_26 = arith.constant 0 : index
    %47 = vector.load %arg7[%c64, %c0_26] : memref<128x32xf32, #tpu.memory_space<vmem>>, vector<8x32xf32>
    %48 = arith.addf %47, %46 : vector<8x32xf32>
    %49 = math.tanh %48 : vector<8x32xf32>
    %50 = arith.truncf %49 : vector<8x32xf32> to vector<8x32xbf16>
    %cst_27 = arith.constant dense<0.000000e+00> : vector<8x32xf32>
    %51 = tpu.matmul %50, %7, %cst_27 {dimension_numbers = #tpu.dot_dimension_numbers<[1], [0], [0], [1], [0, 0, 1, 1], [], []>} : vector<8x32xbf16>, vector<32x32xbf16>, vector<8x32xf32> -> vector<8x32xf32>
    %c72 = arith.constant 72 : index
    %c0_28 = arith.constant 0 : index
    %52 = vector.load %arg7[%c72, %c0_28] : memref<128x32xf32, #tpu.memory_space<vmem>>, vector<8x32xf32>
    %53 = arith.addf %52, %51 : vector<8x32xf32>
    %54 = math.tanh %53 : vector<8x32xf32>
    %55 = arith.truncf %54 : vector<8x32xf32> to vector<8x32xbf16>
    %cst_29 = arith.constant dense<0.000000e+00> : vector<8x32xf32>
    %56 = tpu.matmul %55, %7, %cst_29 {dimension_numbers = #tpu.dot_dimension_numbers<[1], [0], [0], [1], [0, 0, 1, 1], [], []>} : vector<8x32xbf16>, vector<32x32xbf16>, vector<8x32xf32> -> vector<8x32xf32>
    %c80 = arith.constant 80 : index
    %c0_30 = arith.constant 0 : index
    %57 = vector.load %arg7[%c80, %c0_30] : memref<128x32xf32, #tpu.memory_space<vmem>>, vector<8x32xf32>
    %58 = arith.addf %57, %56 : vector<8x32xf32>
    %59 = math.tanh %58 : vector<8x32xf32>
    %60 = arith.truncf %59 : vector<8x32xf32> to vector<8x32xbf16>
    %cst_31 = arith.constant dense<0.000000e+00> : vector<8x32xf32>
    %61 = tpu.matmul %60, %7, %cst_31 {dimension_numbers = #tpu.dot_dimension_numbers<[1], [0], [0], [1], [0, 0, 1, 1], [], []>} : vector<8x32xbf16>, vector<32x32xbf16>, vector<8x32xf32> -> vector<8x32xf32>
    %c88 = arith.constant 88 : index
    %c0_32 = arith.constant 0 : index
    %62 = vector.load %arg7[%c88, %c0_32] : memref<128x32xf32, #tpu.memory_space<vmem>>, vector<8x32xf32>
    %63 = arith.addf %62, %61 : vector<8x32xf32>
    %64 = math.tanh %63 : vector<8x32xf32>
    %65 = arith.truncf %64 : vector<8x32xf32> to vector<8x32xbf16>
    %cst_33 = arith.constant dense<0.000000e+00> : vector<8x32xf32>
    %66 = tpu.matmul %65, %7, %cst_33 {dimension_numbers = #tpu.dot_dimension_numbers<[1], [0], [0], [1], [0, 0, 1, 1], [], []>} : vector<8x32xbf16>, vector<32x32xbf16>, vector<8x32xf32> -> vector<8x32xf32>
    %c96 = arith.constant 96 : index
    %c0_34 = arith.constant 0 : index
    %67 = vector.load %arg7[%c96, %c0_34] : memref<128x32xf32, #tpu.memory_space<vmem>>, vector<8x32xf32>
    %68 = arith.addf %67, %66 : vector<8x32xf32>
    %69 = math.tanh %68 : vector<8x32xf32>
    %70 = arith.truncf %69 : vector<8x32xf32> to vector<8x32xbf16>
    %cst_35 = arith.constant dense<0.000000e+00> : vector<8x32xf32>
    %71 = tpu.matmul %70, %7, %cst_35 {dimension_numbers = #tpu.dot_dimension_numbers<[1], [0], [0], [1], [0, 0, 1, 1], [], []>} : vector<8x32xbf16>, vector<32x32xbf16>, vector<8x32xf32> -> vector<8x32xf32>
    %c104 = arith.constant 104 : index
    %c0_36 = arith.constant 0 : index
    %72 = vector.load %arg7[%c104, %c0_36] : memref<128x32xf32, #tpu.memory_space<vmem>>, vector<8x32xf32>
    %73 = arith.addf %72, %71 : vector<8x32xf32>
    %74 = math.tanh %73 : vector<8x32xf32>
    %75 = arith.truncf %74 : vector<8x32xf32> to vector<8x32xbf16>
    %cst_37 = arith.constant dense<0.000000e+00> : vector<8x32xf32>
    %76 = tpu.matmul %75, %7, %cst_37 {dimension_numbers = #tpu.dot_dimension_numbers<[1], [0], [0], [1], [0, 0, 1, 1], [], []>} : vector<8x32xbf16>, vector<32x32xbf16>, vector<8x32xf32> -> vector<8x32xf32>
    %c112 = arith.constant 112 : index
    %c0_38 = arith.constant 0 : index
    %77 = vector.load %arg7[%c112, %c0_38] : memref<128x32xf32, #tpu.memory_space<vmem>>, vector<8x32xf32>
    %78 = arith.addf %77, %76 : vector<8x32xf32>
    %79 = math.tanh %78 : vector<8x32xf32>
    %80 = arith.truncf %79 : vector<8x32xf32> to vector<8x32xbf16>
    %cst_39 = arith.constant dense<0.000000e+00> : vector<8x32xf32>
    %81 = tpu.matmul %80, %7, %cst_39 {dimension_numbers = #tpu.dot_dimension_numbers<[1], [0], [0], [1], [0, 0, 1, 1], [], []>} : vector<8x32xbf16>, vector<32x32xbf16>, vector<8x32xf32> -> vector<8x32xf32>
    %c120 = arith.constant 120 : index
    %c0_40 = arith.constant 0 : index
    %82 = vector.load %arg7[%c120, %c0_40] : memref<128x32xf32, #tpu.memory_space<vmem>>, vector<8x32xf32>
    %83 = arith.addf %82, %81 : vector<8x32xf32>
    %84 = math.tanh %83 : vector<8x32xf32>
    %85 = arith.truncf %84 : vector<8x32xf32> to vector<8x32xbf16>
    %c0_41 = arith.constant 0 : index
    %c0_42 = arith.constant 0 : index
    %86 = vector.load %arg4[%c0_41, %c0_42] : memref<32x128xbf16, #tpu.memory_space<vmem>>, vector<32x128xbf16>
    %cst_43 = arith.constant dense<0.000000e+00> : vector<8x128xf32>
    %87 = tpu.matmul %85, %86, %cst_43 {dimension_numbers = #tpu.dot_dimension_numbers<[1], [0], [0], [1], [0, 0, 1, 1], [], []>} : vector<8x32xbf16>, vector<32x128xbf16>, vector<8x128xf32> -> vector<8x128xf32>
    %c0_44 = arith.constant 0 : index
    %c0_45 = arith.constant 0 : index
    %88 = vector.load %arg5[%c0_44, %c0_45] : memref<1x128xf32, #tpu.memory_space<vmem>>, vector<1x128xf32>
    %89 = vector.broadcast %88 : vector<1x128xf32> to vector<8x128xf32>
    %90 = arith.addf %87, %89 : vector<8x128xf32>
    %c0_46 = arith.constant 0 : index
    %c0_47 = arith.constant 0 : index
    %91 = vector.load %arg6[%c0_46, %c0_47] : memref<8x128xf32, #tpu.memory_space<vmem>>, vector<8x128xf32>
    tpu.vector_store %arg6[%c0_46, %c0_47], %90 {strides = array<i32>} : memref<8x128xf32, #tpu.memory_space<vmem>>, vector<8x128xf32>,
    return
  }
}

</mosaic_0001>

<bundles_post_ra>
// kernel: mnist_classifier_forward.1
= control target key start
LH: loop header
LB: loop body
LE: loop exit
PB: predicated region body
PF: predicated region fallthrough
CT: control target
= control target key end

     0   :  { %vm92_vm0 = vcmask 130048   ;;  %vm166_vm1 = vcmask 261120   ;;  %s842_s1 = inlined_call_operand.vmem [shape: bf16[16,32], index: 1, kind: input, shape index: {}]   ;;  %s843_s0 = inlined_call_operand.vmem [shape: bf16[128,16], index: 0, kind: input, shape index: {}]   ;;  %s844_s3 = inlined_call_operand.vmem [shape: f32[1,32], index: 3, kind: input, shape index: {}]   ;;  %s845_s2 = inlined_call_operand.vmem [shape: bf16[32,32], index: 2, kind: input, shape index: {}]   ;;  %s846_s4 = inlined_call_operand.vmem [shape: bf16[32,128], index: 4, kind: input, shape index: {}]   ;;  %s847_s5 = inlined_call_operand.vmem [shape: f32[1,128], index: 5, kind: input, shape index: {}]   ;;  %s848_s6 = inlined_call_operand.vmem [shape: f32[8,128], index: 6, kind: output, shape index: {}]  }
   0x1   :  { %v627_v0 = vld [vmem:[%s842_s1] sm:$0xff]  ;;  %v712_v2 = vld [vmem:[%s845_s2 + $0x8] sm:$0xff]  ;;  %v626_v4 = vld [vmem:[%s843_s0 + $0x38] sm:$0xff] }
   0x2   :  { %v619_v1 = vld [vmem:[%s843_s0] sm:$0xff]  ;;  %124 = vmatpush.bf16.msra.mxu0 %v627_v0  ;;  %632 = vmatpush.bf16.msra.mxu2 %v627_v0  ;;  %v620_v5 = vld [vmem:[%s843_s0 + $0x8] sm:$0xff]  ;;  %v621_v28 = vld [vmem:[%s843_s0 + $0x10] sm:$0xff] }
   0x3   :  { %211 = vmatpush.bf16.msra.mxu1 %v712_v2  ;;  %v718_v3 = vld [vmem:[%s845_s2] sm:$0xff]  ;;  %251 = vmatpush.bf16.msra.mxu3 %v712_v2  ;;  %v622_v45 = vld [vmem:[%s843_s0 + $0x18] sm:$0xff] }
   0x4   :  { %v742_v6 = vld [vmem:[%s844_s3] ss:$0 sm:$0xff] }
   0x5   :  { %579 = vmatmul.msk.bf16.vlgmr.msra.gmra.mxu0 %vm92_vm0, %v619_v1  ;;  %586 = vmatmul.msk.bf16.vlgmr.msra.gmra.mxu2 %vm92_vm0, %v626_v4  ;;  %v623_v62 = vld [vmem:[%s843_s0 + $0x20] sm:$0xff] }
   0x6   :  { %231 = vmatpush.bf16.msrb.mxu2 %v712_v2 }
   0x7   :  { %212 = vmatpush.bf16.msra.mxu1 %v718_v3  ;;  %252 = vmatpush.bf16.msra.mxu3 %v718_v3 }
   0xa   :  { %232 = vmatpush.bf16.msrb.mxu2 %v718_v3 }
   0xb   :  { %271 = vmatpush.bf16.msrb.mxu1 %v712_v2  ;;  %311 = vmatpush.bf16.msrb.mxu3 %v712_v2 }
   0xe   :  { %291 = vmatpush.bf16.msra.mxu2 %v712_v2 }
   0xf   :  { %272 = vmatpush.bf16.msrb.mxu1 %v718_v3  ;;  %312 = vmatpush.bf16.msrb.mxu3 %v718_v3 }
  0x12   :  { %292 = vmatpush.bf16.msra.mxu2 %v718_v3 }
  0x15   :  { %580 = vmatmul.msk.bf16.gmra.mxu0 %vm92_vm0, %v620_v5 }
  0x25   :  { %581 = vmatmul.msk.bf16.gmra.mxu0 %vm92_vm0, %v621_v28 }
  0x35   :  { %582 = vmatmul.msk.bf16.gmra.mxu0 %vm92_vm0, %v622_v45 }
  0x45   :  { %583 = vmatmul.msk.bf16.gmra.mxu0 %vm92_vm0, %v623_v62 }
  0x82   :  { %v126_v7 = vpop.f32.mrf.mxu0 }
  0x83   :  { %v127_v8 = vadd.f32 %v742_v6, %v126_v7 }
  0x85   :  { %167 = vst.msk [vmem:[#allocation2] sm:$0xff] %vm166_vm1, %v127_v8 }
  0x88   :  { %v161_v14 = vpop.f32.mrf.mxu2 }
  0x89   :  { %v162_v16 = vadd.f32 %v742_v6, %v161_v14 }
  0x8a   :  { %v128_v9 = vpop.f32.mrf.mxu0 }
  0x8b   :  { %v129_v10 = vadd.f32 %v742_v6, %v128_v9  ;;  %181 = vst.msk [vmem:[#allocation2 + $0x70] sm:$0xff] %vm166_vm1, %v162_v16 }
  0x8c   :  { %v187_v11 = vld [vmem:[#allocation2] sm:$0xff] }
  0x8d   :  { %168 = vst.msk [vmem:[#allocation2 + $0x8] sm:$0xff] %vm166_vm1, %v129_v10  ;;  %635 = vtanh.f32 %v187_v11 }
  0x90   :  { %v163_v18 = vpop.f32.mrf.mxu2 }
  0x91   :  { %v164_v20 = vadd.f32 %v742_v6, %v163_v18  ;;  %v624_v18 = vld [vmem:[%s843_s0 + $0x28] sm:$0xff] }
  0x92   :  { %v131_v15 = vpop.f32.mrf.mxu0  ;;  %584 = vmatmul.msk.bf16.gmra.mxu0 %vm92_vm0, %v624_v18 }
  0x93   :  { %v636_v12 = vpop.eup %635  ;;  %v132_v17 = vadd.f32 %v742_v6, %v131_v15  ;;  %182 = vst.msk [vmem:[#allocation2 + $0x78] sm:$0xff] %vm166_vm1, %v164_v20 }
  0x94   :  { %v189_v13 = vpack.c.bf16 %v636_v12, %v636_v12  ;;  %v218_v23 = vld [vmem:[#allocation2 + $0x8] sm:$0xff] }
  0x95   :  { %169 = vst.msk [vmem:[#allocation2 + $0x10] sm:$0xff] %vm166_vm1, %v132_v17 }
  0x96   :  { %595 = vmatmul.msk.bf16.vlgmr.msra.gmra.mxu1 %vm166_vm1, %v189_v13 }
  0x97   :  { %331 = vmatpush.bf16.msra.mxu1 %v712_v2 }
  0x9a   :  { %v133_v19 = vpop.f32.mrf.mxu0 }
  0x9b   :  { %332 = vmatpush.bf16.msra.mxu1 %v718_v3  ;;  %v134_v21 = vadd.f32 %v742_v6, %v133_v19 }
  0x9c   :  { %v238_v29 = vld [vmem:[#allocation2 + $0x10] sm:$0xff] }
  0x9d   :  { %170 = vst.msk [vmem:[#allocation2 + $0x18] sm:$0xff] %vm166_vm1, %v134_v21 }
  0xa2   :  { %v136_v35 = vpop.f32.mrf.mxu0 }
  0xa3   :  { %v137_v36 = vadd.f32 %v742_v6, %v136_v35 }
  0xa4   :  { %v258_v40 = vld [vmem:[#allocation2 + $0x18] sm:$0xff] }
  0xa5   :  { %171 = vst.msk [vmem:[#allocation2 + $0x20] sm:$0xff] %vm166_vm1, %v137_v36 }
  0xaa   :  { %v138_v37 = vpop.f32.mrf.mxu0 }
  0xab   :  { %v139_v38 = vadd.f32 %v742_v6, %v138_v37 }
  0xac   :  { %v278_v46 = vld [vmem:[#allocation2 + $0x20] sm:$0xff] }
  0xad   :  { %172 = vst.msk [vmem:[#allocation2 + $0x28] sm:$0xff] %vm166_vm1, %v139_v38 }
  0xb2   :  { %v141_v52 = vpop.f32.mrf.mxu0 }
  0xb3   :  { %v142_v53 = vadd.f32 %v742_v6, %v141_v52 }
  0xb4   :  { %v298_v57 = vld [vmem:[#allocation2 + $0x28] sm:$0xff] }
  0xb5   :  { %173 = vst.msk [vmem:[#allocation2 + $0x30] sm:$0xff] %vm166_vm1, %v142_v53 }
  0xba   :  { %v143_v54 = vpop.f32.mrf.mxu0 }
  0xbb   :  { %v144_v55 = vadd.f32 %v742_v6, %v143_v54 }
  0xbc   :  { %v318_v63 = vld [vmem:[#allocation2 + $0x30] sm:$0xff] }
  0xbd   :  { %174 = vst.msk [vmem:[#allocation2 + $0x38] sm:$0xff] %vm166_vm1, %v144_v55 }
  0xc2   :  { %v146_v8 = vpop.f32.mrf.mxu0 }
  0xc3   :  { %v147_v9 = vadd.f32 %v742_v6, %v146_v8 }
  0xc4   :  { %v338_v13 = vld [vmem:[#allocation2 + $0x38] sm:$0xff] }
  0xc5   :  { %175 = vst.msk [vmem:[#allocation2 + $0x40] sm:$0xff] %vm166_vm1, %v147_v9  ;;  %v498_v9 = vld [vmem:[#allocation2 + $0x78] sm:$0xff] }
  0xca   :  { %v148_v10 = vpop.f32.mrf.mxu0 }
  0xcb   :  { %v149_v11 = vadd.f32 %v742_v6, %v148_v10 }
  0xcc   :  { %v358_v19 = vld [vmem:[#allocation2 + $0x40] sm:$0xff] }
  0xcd   :  { %176 = vst.msk [vmem:[#allocation2 + $0x48] sm:$0xff] %vm166_vm1, %v149_v11 }
 0x113   :  { %v214_v22 = vpop.f32.mrf.mxu1 }
 0x114   :  { %v219_v24 = vadd.f32 %v218_v23, %v214_v22 }
 0x116   :  { %637 = vtanh.f32 %v219_v24 }
 0x11b   :  { %v216_v25 = vpop.f32.mrf.mxu1 }
 0x11c   :  { %v638_v26 = vpop.eup %637  ;;  %v151_v25 = vpop.f32.mrf.mxu0 }
 0x11d   :  { %v221_v27 = vpack.c.bf16 %v638_v26, %v638_v26  ;;  %v152_v26 = vadd.f32 %v742_v6, %v151_v25 }
 0x11f   :  { %596 = vmatmul.msk.bf16.vlgmr.msrb.gmra.mxu2 %vm166_vm1, %v221_v27  ;;  %177 = vst.msk [vmem:[#allocation2 + $0x50] sm:$0xff] %vm166_vm1, %v152_v26 }
 0x120   :  { %351 = vmatpush.bf16.msrb.mxu2 %v712_v2 }
 0x124   :  { %352 = vmatpush.bf16.msrb.mxu2 %v718_v3  ;;  %v153_v27 = vpop.f32.mrf.mxu0 }
 0x125   :  { %v154_v28 = vadd.f32 %v742_v6, %v153_v27 }
 0x127   :  { %178 = vst.msk [vmem:[#allocation2 + $0x58] sm:$0xff] %vm166_vm1, %v154_v28 }
 0x12e   :  { %v418_v45 = vld [vmem:[#allocation2 + $0x58] sm:$0xff] }
 0x1a2   :  { %v234_v30 = vpop.f32.mrf.mxu2 }
 0x1a3   :  { %v239_v31 = vadd.f32 %v238_v29, %v234_v30  ;;  %v378_v30 = vld [vmem:[#allocation2 + $0x48] sm:$0xff] }
 0x1a5   :  { %639 = vtanh.f32 %v239_v31 }
 0x1aa   :  { %v236_v32 = vpop.f32.mrf.mxu2 }
 0x1ab   :  { %v640_v33 = vpop.eup %639 }
 0x1ac   :  { %v241_v34 = vpack.c.bf16 %v640_v33, %v640_v33 }
 0x1ae   :  { %597 = vmatmul.msk.bf16.vlgmr.msra.gmra.mxu3 %vm166_vm1, %v241_v34 }
 0x1af   :  { %371 = vmatpush.bf16.msra.mxu3 %v712_v2 }
 0x1b3   :  { %372 = vmatpush.bf16.msra.mxu3 %v718_v3 }
 0x231   :  { %v254_v39 = vpop.f32.mrf.mxu3 }
 0x232   :  { %v259_v41 = vadd.f32 %v258_v40, %v254_v39 }
 0x234   :  { %641 = vtanh.f32 %v259_v41 }
 0x239   :  { %v256_v42 = vpop.f32.mrf.mxu3 }
 0x23a   :  { %v642_v43 = vpop.eup %641 }
 0x23b   :  { %v261_v44 = vpack.c.bf16 %v642_v43, %v642_v43 }
 0x23d   :  { %598 = vmatmul.msk.bf16.vlgmr.msrb.gmra.mxu1 %vm166_vm1, %v261_v44 }
 0x23e   :  { %391 = vmatpush.bf16.msrb.mxu1 %v712_v2 }
 0x242   :  { %392 = vmatpush.bf16.msrb.mxu1 %v718_v3 }
 0x2ba   :  { %v274_v47 = vpop.f32.mrf.mxu1 }
 0x2bb   :  { %v279_v48 = vadd.f32 %v278_v46, %v274_v47 }
 0x2bd   :  { %643 = vtanh.f32 %v279_v48 }
 0x2c2   :  { %v276_v49 = vpop.f32.mrf.mxu1 }
 0x2c3   :  { %v644_v50 = vpop.eup %643 }
 0x2c4   :  { %v281_v51 = vpack.c.bf16 %v644_v50, %v644_v50 }
 0x2c6   :  { %599 = vmatmul.msk.bf16.vlgmr.msra.gmra.mxu2 %vm166_vm1, %v281_v51 }
 0x2c7   :  { %411 = vmatpush.bf16.msra.mxu2 %v712_v2 }
 0x2cb   :  { %412 = vmatpush.bf16.msra.mxu2 %v718_v3 }
 0x349   :  { %v294_v56 = vpop.f32.mrf.mxu2 }
 0x34a   :  { %v299_v58 = vadd.f32 %v298_v57, %v294_v56 }
 0x34c   :  { %645 = vtanh.f32 %v299_v58 }
 0x351   :  { %v296_v59 = vpop.f32.mrf.mxu2 }
 0x352   :  { %v646_v60 = vpop.eup %645 }
 0x353   :  { %v301_v61 = vpack.c.bf16 %v646_v60, %v646_v60 }
 0x355   :  { %600 = vmatmul.msk.bf16.vlgmr.msrb.gmra.mxu3 %vm166_vm1, %v301_v61  ;;  %v631_v61 = vld [vmem:[%s846_s4 + $0x8] sm:$0xff] }
 0x356   :  { %431 = vmatpush.bf16.msrb.mxu3 %v712_v2 }
 0x35a   :  { %432 = vmatpush.bf16.msrb.mxu3 %v718_v3 }
 0x3d8   :  { %v314_v0 = vpop.f32.mrf.mxu3 }
 0x3d9   :  { %v319_v1 = vadd.f32 %v318_v63, %v314_v0  ;;  %v478_v63 = vld [vmem:[#allocation2 + $0x70] sm:$0xff] }
 0x3db   :  { %647 = vtanh.f32 %v319_v1 }
 0x3e0   :  { %v316_v4 = vpop.f32.mrf.mxu3 }
 0x3e1   :  { %v648_v5 = vpop.eup %647 }
 0x3e2   :  { %v321_v7 = vpack.c.bf16 %v648_v5, %v648_v5 }
 0x3e4   :  { %601 = vmatmul.msk.bf16.vlgmr.msra.gmra.mxu1 %vm166_vm1, %v321_v7  ;;  %v630_v7 = vld [vmem:[%s846_s4] sm:$0xff] }
 0x3e5   :  { %451 = vmatpush.bf16.msra.mxu1 %v712_v2 }
 0x3e9   :  { %452 = vmatpush.bf16.msra.mxu1 %v718_v3 }
 0x461   :  { %v334_v12 = vpop.f32.mrf.mxu1 }
 0x462   :  { %v339_v14 = vadd.f32 %v338_v13, %v334_v12 }
 0x464   :  { %649 = vtanh.f32 %v339_v14  ;;  %v634_v14 = vld [vmem:[%s847_s5] ss:$0 sm:$0xff] }
 0x469   :  { %v336_v15 = vpop.f32.mrf.mxu1 }
 0x46a   :  { %v650_v16 = vpop.eup %649 }
 0x46b   :  { %v341_v17 = vpack.c.bf16 %v650_v16, %v650_v16 }
 0x46d   :  { %602 = vmatmul.msk.bf16.vlgmr.msrb.gmra.mxu2 %vm166_vm1, %v341_v17 }
 0x46e   :  { %471 = vmatpush.bf16.msrb.mxu2 %v712_v2 }
 0x472   :  { %472 = vmatpush.bf16.msrb.mxu2 %v718_v3 }
 0x4f0   :  { %v354_v20 = vpop.f32.mrf.mxu2 }
 0x4f1   :  { %v359_v21 = vadd.f32 %v358_v19, %v354_v20 }
 0x4f3   :  { %651 = vtanh.f32 %v359_v21 }
 0x4f8   :  { %v356_v22 = vpop.f32.mrf.mxu2 }
 0x4f9   :  { %v652_v23 = vpop.eup %651 }
 0x4fa   :  { %v361_v24 = vpack.c.bf16 %v652_v23, %v652_v23 }
 0x4fc   :  { %603 = vmatmul.msk.bf16.vlgmr.msra.gmra.mxu3 %vm166_vm1, %v361_v24 }
 0x4fd   :  { %491 = vmatpush.bf16.msra.mxu3 %v712_v2  ;;  %v625_v2 = vld [vmem:[%s843_s0 + $0x30] sm:$0xff] }
 0x4fe   :  { %585 = vmatmul.msk.bf16.gmra.mxu0 %vm92_vm0, %v625_v2 }
 0x501   :  { %492 = vmatpush.bf16.msra.mxu3 %v718_v3  ;;  %v398_v3 = vld [vmem:[#allocation2 + $0x50] sm:$0xff] }
 0x57b   :  { %v156_v40 = vpop.f32.mrf.mxu0 }
 0x57c   :  { %v157_v41 = vadd.f32 %v742_v6, %v156_v40 }
 0x57e   :  { %179 = vst.msk [vmem:[#allocation2 + $0x60] sm:$0xff] %vm166_vm1, %v157_v41 }
 0x57f   :  { %v374_v29 = vpop.f32.mrf.mxu3 }
 0x580   :  { %v379_v31 = vadd.f32 %v378_v30, %v374_v29 }
 0x582   :  { %653 = vtanh.f32 %v379_v31 }
 0x583   :  { %v158_v42 = vpop.f32.mrf.mxu0 }
 0x584   :  { %v159_v43 = vadd.f32 %v742_v6, %v158_v42 }
 0x585   :  { %v438_v50 = vld [vmem:[#allocation2 + $0x60] sm:$0xff] }
 0x586   :  { %180 = vst.msk [vmem:[#allocation2 + $0x68] sm:$0xff] %vm166_vm1, %v159_v43 }
 0x587   :  { %v376_v32 = vpop.f32.mrf.mxu3 }
 0x588   :  { %v654_v33 = vpop.eup %653 }
 0x589   :  { %v381_v34 = vpack.c.bf16 %v654_v33, %v654_v33 }
 0x58b   :  { %604 = vmatmul.msk.bf16.vlgmr.msrb.gmra.mxu1 %vm166_vm1, %v381_v34 }
 0x58c   :  { %531 = vmatpush.bf16.msrb.mxu1 %v631_v61 }
 0x58d   :  { %v458_v56 = vld [vmem:[#allocation2 + $0x68] sm:$0xff] }
 0x590   :  { %532 = vmatpush.bf16.msrb.mxu1 %v630_v7 }
 0x608   :  { %v394_v35 = vpop.f32.mrf.mxu1 }
 0x609   :  { %v399_v36 = vadd.f32 %v398_v3, %v394_v35 }
 0x60b   :  { %655 = vtanh.f32 %v399_v36 }
 0x610   :  { %v396_v37 = vpop.f32.mrf.mxu1 }
 0x611   :  { %v656_v38 = vpop.eup %655 }
 0x612   :  { %v401_v39 = vpack.c.bf16 %v656_v38, %v656_v38 }
 0x614   :  { %605 = vmatmul.msk.bf16.vlgmr.msra.gmra.mxu2 %vm166_vm1, %v401_v39 }
 0x697   :  { %v414_v44 = vpop.f32.mrf.mxu2 }
 0x698   :  { %v419_v46 = vadd.f32 %v418_v45, %v414_v44 }
 0x69a   :  { %657 = vtanh.f32 %v419_v46 }
 0x69f   :  { %v416_v47 = vpop.f32.mrf.mxu2 }
 0x6a0   :  { %v658_v48 = vpop.eup %657 }
 0x6a1   :  { %v421_v49 = vpack.c.bf16 %v658_v48, %v658_v48 }
 0x6a3   :  { %606 = vmatmul.msk.bf16.vlgmr.msrb.gmra.mxu3 %vm166_vm1, %v421_v49 }
 0x726   :  { %v434_v51 = vpop.f32.mrf.mxu3 }
 0x727   :  { %v439_v52 = vadd.f32 %v438_v50, %v434_v51 }
 0x729   :  { %659 = vtanh.f32 %v439_v52 }
 0x72e   :  { %v436_v53 = vpop.f32.mrf.mxu3 }
 0x72f   :  { %v660_v54 = vpop.eup %659 }
 0x730   :  { %v441_v55 = vpack.c.bf16 %v660_v54, %v660_v54 }
 0x732   :  { %607 = vmatmul.msk.bf16.vlgmr.msra.gmra.mxu1 %vm166_vm1, %v441_v55 }
 0x7af   :  { %v454_v6 = vpop.f32.mrf.mxu1 }
 0x7b0   :  { %v459_v57 = vadd.f32 %v458_v56, %v454_v6 }
 0x7b2   :  { %661 = vtanh.f32 %v459_v57 }
 0x7b7   :  { %v456_v58 = vpop.f32.mrf.mxu1 }
 0x7b8   :  { %v662_v59 = vpop.eup %661 }
 0x7b9   :  { %v461_v60 = vpack.c.bf16 %v662_v59, %v662_v59 }
 0x7bb   :  { %608 = vmatmul.msk.bf16.vlgmr.msrb.gmra.mxu2 %vm166_vm1, %v461_v60 }
 0x83e   :  { %v474_v62 = vpop.f32.mrf.mxu2 }
 0x83f   :  { %v479_v0 = vadd.f32 %v478_v63, %v474_v62 }
 0x841   :  { %663 = vtanh.f32 %v479_v0 }
 0x846   :  { %v476_v1 = vpop.f32.mrf.mxu2 }
 0x847   :  { %v664_v4 = vpop.eup %663 }
 0x848   :  { %v481_v5 = vpack.c.bf16 %v664_v4, %v664_v4 }
 0x84a   :  { %609 = vmatmul.msk.bf16.vlgmr.msra.gmra.mxu3 %vm166_vm1, %v481_v5 }
 0x8cd   :  { %v494_v8 = vpop.f32.mrf.mxu3 }
 0x8ce   :  { %v499_v10 = vadd.f32 %v498_v9, %v494_v8 }
 0x8d0   :  { %665 = vtanh.f32 %v499_v10 }
 0x8d5   :  { %v496_v11 = vpop.f32.mrf.mxu3 }
 0x8d6   :  { %v666_v12 = vpop.eup %665 }
 0x8d7   :  { %v501_v13 = vpack.c.bf16 %v666_v12, %v666_v12 }
 0x8d9   :  { %618 = vmatmul.msk.bf16.vlgmr.msrb.gmra.mxu1 %vm166_vm1, %v501_v13 }
 0x956   :  { %v534_v15 = vpop.f32.mrf.mxu1 }
 0x957   :  { %v535_v16 = vadd.f32 %v634_v14, %v534_v15 }
 0x959   :  { %538 = vst [vmem:[%s848_s6] sm:$0xff] %v535_v16 }
 0x95e   :  { %v536_v17 = vpop.f32.mrf.mxu1 }

</bundles_post_ra>
